<compile_context>
chip_gen: v5e
topology: v5e:2x2
jax: 0.10.0
libtpu: 0.0.40
codegen_flags: <defaults>
</compile_context>

<pallas_src>
import functools

import jax
import jax.numpy as jnp
from jax.experimental import pallas as pl
from jax.experimental.pallas import tpu as pltpu


LANE = 128


def _round_up(n, m):
    return ((n + m - 1) // m) * m


def _pad_to(a, shape):
    pads = [(0, t - s) for s, t in zip(a.shape, shape)]
    return jnp.pad(a, pads)


# -----------------------------------------------------------------------------
# Fused kernel: mlp -> relu -> conv1 -> relu -> conv2 -> relu -> classifier
# -----------------------------------------------------------------------------
def _fused_forward_kernel(x_ref, w_ref, b_ref, adj_ref, o_ref, *,
                          num_relations, cp, hp, op, repo_pad):
    f32 = jnp.float32
    bf16 = jnp.bfloat16
    R = num_relations

    # Column offsets into the packed bf16 weight slab (all multiples of 128).
    o_mlp = 0
    o_c1rel = hp
    o_c1root = hp + R * hp
    o_c2rel = 2 * hp + R * hp
    o_c2root = 2 * hp + 2 * R * hp
    o_cls = 3 * hp + 2 * R * hp
    # Lane offsets into the packed f32 bias slab.
    b_mlp, b_c1, b_c2, b_cls = 0, hp, 2 * hp, 3 * hp

    # ---- mlp + relu (dropout == identity in eval mode) ----
    h = jnp.dot(x_ref[...], w_ref[0:cp, o_mlp:o_mlp + hp],
                preferred_element_type=f32)
    h = jnp.maximum(h + b_ref[:, b_mlp:b_mlp + hp], 0.0)

    # ---- RGCNConv (per-relation mean aggregation) + relu, applied twice ----
    def rgcn(h_f32, o_rel, o_root, b_off, adj_base):
        hb = h_f32.astype(bf16)
        # Root transform + bias.
        acc = jnp.dot(hb, w_ref[0:hp, o_root:o_root + hp],
                      preferred_element_type=f32)
        acc = acc + b_ref[:, b_off:b_off + hp]
        # All R relation messages in ONE wide MXU matmul (output width R*hp).
        msgs = jnp.dot(hb, w_ref[0:hp, o_rel:o_rel + R * hp],
                       preferred_element_type=f32)
        # Mean aggregation: R small, mutually independent f32 matmuls against
        # the f32 row-normalized adjacency (no bf16 recast of messages).
        for r in range(R):
            acc = acc + jnp.dot(adj_ref[adj_base + r],
                                msgs[:, r * hp:(r + 1) * hp],
                                preferred_element_type=f32)
        return jnp.maximum(acc, 0.0)

    h = rgcn(h, o_c1rel, o_c1root, b_c1, 0)
    h = rgcn(h, o_c2rel, o_c2root, b_c2, R)

    # ---- classifier on (sublane-padded) repo rows only ----
    out = jnp.dot(h[0:repo_pad].astype(bf16),
                  w_ref[0:hp, o_cls:o_cls + op],
                  preferred_element_type=f32)
    o_ref[...] = out + b_ref[:, b_cls:b_cls + op]


# -----------------------------------------------------------------------------
# Glue: dense per-relation row-normalized adjacency via one-hot matmuls
# (no serialized scatter).  Kept f32 so the 1/deg mean scaling is exact.
# -----------------------------------------------------------------------------
def build_norm_adj(edge_index, edge_type, num_nodes, num_relations):
    # TODO(synk): for realistic graph sizes replace the dense (R, N, N)
    # adjacency with a scalar-prefetched edge-list gather / segment-mean
    # kernel (O(E*H), no N^2 VMEM footprint -- critical on v7x's 64 MiB VMEM),
    # tile the node dimension with a "parallel" grid axis (2 TCs on v7x), and
    # pad the adjacency's source-node dim to a multiple of 128 for a
    # lane-dense aggregation K dim.
    src = edge_index[0]
    dst = edge_index[1]
    oh_rd = jax.nn.one_hot(edge_type * num_nodes + dst,
                           num_relations * num_nodes, dtype=jnp.float32)
    oh_src = jax.nn.one_hot(src, num_nodes, dtype=jnp.float32)
    counts = oh_rd.T @ oh_src                                  # (R*N, N)
    adj = counts.reshape(num_relations, num_nodes, num_nodes)
    deg = adj.sum(axis=2, keepdims=True)                       # in-degree / rel
    return adj / jnp.maximum(deg, 1.0)                         # deg 0 rows stay 0


# -----------------------------------------------------------------------------
# Model parameters (PyTorch layout: Linear weights are (out, in))
# -----------------------------------------------------------------------------
class BipartiteRGCNParams:
    def __init__(self, key, in_channels, hidden_channels, out_channels, num_relations):
        ks = jax.random.split(key, 10)
        s = 0.1
        # nn.Linear(in, hidden): weight (hidden, in), bias (hidden,)
        self.mlp_w = jax.random.normal(ks[0], (hidden_channels, in_channels), jnp.float32) * s
        self.mlp_b = jax.random.normal(ks[1], (hidden_channels,), jnp.float32) * s
        # RGCNConv(hidden, hidden, R): rel weights (R, in, out), root (in, out), bias (out,)
        self.c1_rel = jax.random.normal(ks[2], (num_relations, hidden_channels, hidden_channels), jnp.float32) * s
        self.c1_root = jax.random.normal(ks[3], (hidden_channels, hidden_channels), jnp.float32) * s
        self.c1_b = jax.random.normal(ks[4], (hidden_channels,), jnp.float32) * s
        self.c2_rel = jax.random.normal(ks[5], (num_relations, hidden_channels, hidden_channels), jnp.float32) * s
        self.c2_root = jax.random.normal(ks[6], (hidden_channels, hidden_channels), jnp.float32) * s
        self.c2_b = jax.random.normal(ks[7], (hidden_channels,), jnp.float32) * s
        # nn.Linear(hidden, out)
        self.cls_w = jax.random.normal(ks[8], (out_channels, hidden_channels), jnp.float32) * s
        self.cls_b = jax.random.normal(ks[9], (out_channels,), jnp.float32) * s


# -----------------------------------------------------------------------------
# One-time weight packing: pad, transpose, cast, concatenate into 2 slabs.
# -----------------------------------------------------------------------------
def prepare_params(params, num_relations):
    bf16 = jnp.bfloat16
    f32 = jnp.float32
    R = num_relations
    hidden, in_c = params.mlp_w.shape
    out_c = params.cls_b.shape[0]
    cp = _round_up(in_c, LANE)
    hp = _round_up(hidden, LANE)
    op = _round_up(out_c, LANE)
    rows = max(cp, hp)

    def cat_rel(w_rel):
        # (R, hidden, hidden) -> (rows, R*hp); each relation block padded to (hp, hp)
        blocks = [_pad_to(w_rel[r], (hp, hp)) for r in range(R)]
        return _pad_to(jnp.concatenate(blocks, axis=1), (rows, R * hp))

    w_slab = jnp.concatenate([
        _pad_to(params.mlp_w.T, (rows, hp)),        # mlp (in -> hidden)
        cat_rel(params.c1_rel),                     # conv1 relation weights
        _pad_to(params.c1_root, (rows, hp)),        # conv1 root weight
        cat_rel(params.c2_rel),                     # conv2 relation weights
        _pad_to(params.c2_root, (rows, hp)),        # conv2 root weight
        _pad_to(params.cls_w.T, (rows, op)),        # classifier (hidden -> out)
    ], axis=1).astype(bf16)

    b_slab = jnp.concatenate([
        _pad_to(params.mlp_b.reshape(1, -1), (1, hp)),
        _pad_to(params.c1_b.reshape(1, -1), (1, hp)),
        _pad_to(params.c2_b.reshape(1, -1), (1, hp)),
        _pad_to(params.cls_b.reshape(1, -1), (1, op)),
    ], axis=1).astype(f32)

    dims = dict(in_c=in_c, hidden=hidden, out_c=out_c)
    return w_slab, b_slab, dims


# -----------------------------------------------------------------------------
# Forward (jitted; per-call glue is just the adjacency build + one pallas_call)
# -----------------------------------------------------------------------------
def _forward_impl(w_slab, b_slab, x, edge_index_ru, edge_index_ur,
                  edge_type_ru, edge_type_ur,
                  num_repos, num_relations, in_c, hidden, out_c):
    num_nodes = x.shape[0]
    n_pad = _round_up(num_nodes, 16)          # bf16 sublane tile
    cp = _round_up(in_c, LANE)
    hp = _round_up(hidden, LANE)
    op = _round_up(out_c, LANE)
    repo_pad = _round_up(num_repos, 16)

    adj1 = build_norm_adj(edge_index_ru, edge_type_ru, n_pad, num_relations)
    adj2 = build_norm_adj(edge_index_ur, edge_type_ur, n_pad, num_relations)
    adj = jnp.concatenate([adj1, adj2], axis=0)       # (2R, n_pad, n_pad) f32

    x_p = _pad_to(x, (n_pad, cp)).astype(jnp.bfloat16)

    # Single fused, gridless pallas_call: all operands fit comfortably in VMEM
    # (< 0.5 MiB), so no grid / pipelining is needed at this scale.
    out_p = pl.pallas_call(
        functools.partial(_fused_forward_kernel, num_relations=num_relations,
                          cp=cp, hp=hp, op=op, repo_pad=repo_pad),
        out_shape=jax.ShapeDtypeStruct((repo_pad, op), jnp.float32),
        compiler_params=pltpu.CompilerParams(vmem_limit_bytes=32 * 1024 * 1024),
    )(x_p, w_slab, b_slab, adj)

    # Drop sublane / lane padding (cheap XLA slice).
    return out_p[:num_repos, :out_c]


bipartite_rgcn_forward = jax.jit(_forward_impl, static_argnums=(7, 8, 9, 10, 11))


# -----------------------------------------------------------------------------
# Main
# -----------------------------------------------------------------------------
if __name__ == "__main__":
    key = jax.random.PRNGKey(0)

    num_repos = 8
    num_users = 8
    num_nodes = num_repos + num_users
    num_relations = 4            # num_event_types
    in_channels = num_relations  # repo feature dim == num_event_types (concat constraint)
    hidden_channels = 32
    out_channels = 4
    num_edges = 64

    k_feat, k_src, k_dst, k_rel, k_par = jax.random.split(key, 5)

    # repo features (standardized) + zero user features, concatenated -> x
    repo_features = jax.random.normal(k_feat, (num_repos, in_channels), jnp.float32)
    repo_features = (repo_features - repo_features.mean()) / repo_features.std()
    user_features = jnp.zeros((num_users, in_channels), jnp.float32)
    x = jnp.concatenate([repo_features, user_features], axis=0)

    # bipartite edges: repo -> user (actor indices offset by num_repos)
    repo_ids = jax.random.randint(k_src, (num_edges,), 0, num_repos)
    actor_ids = jax.random.randint(k_dst, (num_edges,), 0, num_users) + num_repos
    edge_index_ru = jnp.stack([repo_ids, actor_ids], axis=0)    # (2, E): src, dst
    edge_index_ur = edge_index_ru[::-1]                          # reversed direction
    edge_type_ru = jax.random.randint(k_rel, (num_edges,), 0, num_relations)
    edge_type_ur = edge_type_ru

    params = BipartiteRGCNParams(k_par, in_channels, hidden_channels,
                                 out_channels, num_relations)
    w_slab, b_slab, dims = prepare_params(params, num_relations)

    out = bipartite_rgcn_forward(w_slab, b_slab, x,
                                 edge_index_ru, edge_index_ur,
                                 edge_type_ru, edge_type_ur,
                                 num_repos, num_relations,
                                 dims["in_c"], dims["hidden"], dims["out_c"])
    out = jax.block_until_ready(out)
    assert out.shape == (num_repos, out_channels)
    print("KERNEL_OK")
</pallas_src>

<mosaic_0001>
module attributes {stable_mosaic.version = 11 : i64} {
  func.func @_fused_forward_kernel(%arg0: memref<16x128xbf16, #tpu.memory_space<vmem>>, %arg1: memref<128x1536xbf16, #tpu.memory_space<vmem>>, %arg2: memref<1x512xf32, #tpu.memory_space<vmem>>, %arg3: memref<8x16x16xf32, #tpu.memory_space<vmem>>, %arg4: memref<16x128xf32, #tpu.memory_space<vmem>>) attributes {dimension_semantics = [], scalar_prefetch = 0 : i64, scratch_operands = 0 : i64, tpu.core_type = #tpu.core_type<tc>} {
    %c0 = arith.constant 0 : index
    %c0_0 = arith.constant 0 : index
    %0 = vector.load %arg0[%c0, %c0_0] : memref<16x128xbf16, #tpu.memory_space<vmem>>, vector<16x128xbf16>
    %c0_1 = arith.constant 0 : index
    %c0_2 = arith.constant 0 : index
    %1 = vector.load %arg1[%c0_1, %c0_2] : memref<128x1536xbf16, #tpu.memory_space<vmem>>, vector<128x128xbf16>
    %cst = arith.constant dense<0.000000e+00> : vector<16x128xf32>
    %2 = tpu.matmul %0, %1, %cst {dimension_numbers = #tpu.dot_dimension_numbers<[1], [0], [0], [1], [0, 0, 1, 1], [], []>} : vector<16x128xbf16>, vector<128x128xbf16>, vector<16x128xf32> -> vector<16x128xf32>
    %c0_3 = arith.constant 0 : index
    %c0_4 = arith.constant 0 : index
    %3 = vector.load %arg2[%c0_3, %c0_4] : memref<1x512xf32, #tpu.memory_space<vmem>>, vector<1x128xf32>
    %4 = vector.broadcast %3 : vector<1x128xf32> to vector<16x128xf32>
    %5 = arith.addf %2, %4 : vector<16x128xf32>
    %cst_5 = arith.constant 0.000000e+00 : f32
    %6 = vector.broadcast %cst_5 : f32 to vector<16x128xf32>
    %7 = arith.maximumf %5, %6 : vector<16x128xf32>
    %8 = arith.truncf %7 : vector<16x128xf32> to vector<16x128xbf16>
    %c0_6 = arith.constant 0 : index
    %c640 = arith.constant 640 : index
    %9 = vector.load %arg1[%c0_6, %c640] : memref<128x1536xbf16, #tpu.memory_space<vmem>>, vector<128x128xbf16>
    %cst_7 = arith.constant dense<0.000000e+00> : vector<16x128xf32>
    %10 = tpu.matmul %8, %9, %cst_7 {dimension_numbers = #tpu.dot_dimension_numbers<[1], [0], [0], [1], [0, 0, 1, 1], [], []>} : vector<16x128xbf16>, vector<128x128xbf16>, vector<16x128xf32> -> vector<16x128xf32>
    %c0_8 = arith.constant 0 : index
    %c128 = arith.constant 128 : index
    %11 = vector.load %arg2[%c0_8, %c128] : memref<1x512xf32, #tpu.memory_space<vmem>>, vector<1x128xf32>
    %12 = vector.broadcast %11 : vector<1x128xf32> to vector<16x128xf32>
    %13 = arith.addf %10, %12 : vector<16x128xf32>
    %c0_9 = arith.constant 0 : index
    %c128_10 = arith.constant 128 : index
    %14 = vector.load %arg1[%c0_9, %c128_10] : memref<128x1536xbf16, #tpu.memory_space<vmem>>, vector<128x512xbf16>
    %cst_11 = arith.constant dense<0.000000e+00> : vector<16x512xf32>
    %15 = tpu.matmul %8, %14, %cst_11 {dimension_numbers = #tpu.dot_dimension_numbers<[1], [0], [0], [1], [0, 0, 1, 1], [], []>} : vector<16x128xbf16>, vector<128x512xbf16>, vector<16x512xf32> -> vector<16x512xf32>
    %c0_12 = arith.constant 0 : index
    %c0_13 = arith.constant 0 : index
    %c0_14 = arith.constant 0 : index
    %16 = vector.load %arg3[%c0_12, %c0_13, %c0_14] : memref<8x16x16xf32, #tpu.memory_space<vmem>>, vector<1x16x16xf32>
    %17 = vector.shape_cast %16 : vector<1x16x16xf32> to vector<16x16xf32>
    %18 = vector.extract_strided_slice %15 {offsets = [0, 0], sizes = [16, 128], strides = [1, 1]} : vector<16x512xf32> to vector<16x128xf32>
    %cst_15 = arith.constant dense<0.000000e+00> : vector<16x128xf32>
    %19 = tpu.matmul %17, %18, %cst_15 {dimension_numbers = #tpu.dot_dimension_numbers<[1], [0], [0], [1], [0, 0, 1, 1], [], []>} : vector<16x16xf32>, vector<16x128xf32>, vector<16x128xf32> -> vector<16x128xf32>
    %20 = arith.addf %13, %19 : vector<16x128xf32>
    %c1 = arith.constant 1 : index
    %c0_16 = arith.constant 0 : index
    %c0_17 = arith.constant 0 : index
    %21 = vector.load %arg3[%c1, %c0_16, %c0_17] : memref<8x16x16xf32, #tpu.memory_space<vmem>>, vector<1x16x16xf32>
    %22 = vector.shape_cast %21 : vector<1x16x16xf32> to vector<16x16xf32>
    %23 = vector.extract_strided_slice %15 {offsets = [0, 128], sizes = [16, 128], strides = [1, 1]} : vector<16x512xf32> to vector<16x128xf32>
    %cst_18 = arith.constant dense<0.000000e+00> : vector<16x128xf32>
    %24 = tpu.matmul %22, %23, %cst_18 {dimension_numbers = #tpu.dot_dimension_numbers<[1], [0], [0], [1], [0, 0, 1, 1], [], []>} : vector<16x16xf32>, vector<16x128xf32>, vector<16x128xf32> -> vector<16x128xf32>
    %25 = arith.addf %20, %24 : vector<16x128xf32>
    %c2 = arith.constant 2 : index
    %c0_19 = arith.constant 0 : index
    %c0_20 = arith.constant 0 : index
    %26 = vector.load %arg3[%c2, %c0_19, %c0_20] : memref<8x16x16xf32, #tpu.memory_space<vmem>>, vector<1x16x16xf32>
    %27 = vector.shape_cast %26 : vector<1x16x16xf32> to vector<16x16xf32>
    %28 = vector.extract_strided_slice %15 {offsets = [0, 256], sizes = [16, 128], strides = [1, 1]} : vector<16x512xf32> to vector<16x128xf32>
    %cst_21 = arith.constant dense<0.000000e+00> : vector<16x128xf32>
    %29 = tpu.matmul %27, %28, %cst_21 {dimension_numbers = #tpu.dot_dimension_numbers<[1], [0], [0], [1], [0, 0, 1, 1], [], []>} : vector<16x16xf32>, vector<16x128xf32>, vector<16x128xf32> -> vector<16x128xf32>
    %30 = arith.addf %25, %29 : vector<16x128xf32>
    %c3 = arith.constant 3 : index
    %c0_22 = arith.constant 0 : index
    %c0_23 = arith.constant 0 : index
    %31 = vector.load %arg3[%c3, %c0_22, %c0_23] : memref<8x16x16xf32, #tpu.memory_space<vmem>>, vector<1x16x16xf32>
    %32 = vector.shape_cast %31 : vector<1x16x16xf32> to vector<16x16xf32>
    %33 = vector.extract_strided_slice %15 {offsets = [0, 384], sizes = [16, 128], strides = [1, 1]} : vector<16x512xf32> to vector<16x128xf32>
    %cst_24 = arith.constant dense<0.000000e+00> : vector<16x128xf32>
    %34 = tpu.matmul %32, %33, %cst_24 {dimension_numbers = #tpu.dot_dimension_numbers<[1], [0], [0], [1], [0, 0, 1, 1], [], []>} : vector<16x16xf32>, vector<16x128xf32>, vector<16x128xf32> -> vector<16x128xf32>
    %35 = arith.addf %30, %34 : vector<16x128xf32>
    %cst_25 = arith.constant 0.000000e+00 : f32
    %36 = vector.broadcast %cst_25 : f32 to vector<16x128xf32>
    %37 = arith.maximumf %35, %36 : vector<16x128xf32>
    %38 = arith.truncf %37 : vector<16x128xf32> to vector<16x128xbf16>
    %c0_26 = arith.constant 0 : index
    %c1280 = arith.constant 1280 : index
    %39 = vector.load %arg1[%c0_26, %c1280] : memref<128x1536xbf16, #tpu.memory_space<vmem>>, vector<128x128xbf16>
    %cst_27 = arith.constant dense<0.000000e+00> : vector<16x128xf32>
    %40 = tpu.matmul %38, %39, %cst_27 {dimension_numbers = #tpu.dot_dimension_numbers<[1], [0], [0], [1], [0, 0, 1, 1], [], []>} : vector<16x128xbf16>, vector<128x128xbf16>, vector<16x128xf32> -> vector<16x128xf32>
    %c0_28 = arith.constant 0 : index
    %c256 = arith.constant 256 : index
    %41 = vector.load %arg2[%c0_28, %c256] : memref<1x512xf32, #tpu.memory_space<vmem>>, vector<1x128xf32>
    %42 = vector.broadcast %41 : vector<1x128xf32> to vector<16x128xf32>
    %43 = arith.addf %40, %42 : vector<16x128xf32>
    %c0_29 = arith.constant 0 : index
    %c768 = arith.constant 768 : index
    %44 = vector.load %arg1[%c0_29, %c768] : memref<128x1536xbf16, #tpu.memory_space<vmem>>, vector<128x512xbf16>
    %cst_30 = arith.constant dense<0.000000e+00> : vector<16x512xf32>
    %45 = tpu.matmul %38, %44, %cst_30 {dimension_numbers = #tpu.dot_dimension_numbers<[1], [0], [0], [1], [0, 0, 1, 1], [], []>} : vector<16x128xbf16>, vector<128x512xbf16>, vector<16x512xf32> -> vector<16x512xf32>
    %c4 = arith.constant 4 : index
    %c0_31 = arith.constant 0 : index
    %c0_32 = arith.constant 0 : index
    %46 = vector.load %arg3[%c4, %c0_31, %c0_32] : memref<8x16x16xf32, #tpu.memory_space<vmem>>, vector<1x16x16xf32>
    %47 = vector.shape_cast %46 : vector<1x16x16xf32> to vector<16x16xf32>
    %48 = vector.extract_strided_slice %45 {offsets = [0, 0], sizes = [16, 128], strides = [1, 1]} : vector<16x512xf32> to vector<16x128xf32>
    %cst_33 = arith.constant dense<0.000000e+00> : vector<16x128xf32>
    %49 = tpu.matmul %47, %48, %cst_33 {dimension_numbers = #tpu.dot_dimension_numbers<[1], [0], [0], [1], [0, 0, 1, 1], [], []>} : vector<16x16xf32>, vector<16x128xf32>, vector<16x128xf32> -> vector<16x128xf32>
    %50 = arith.addf %43, %49 : vector<16x128xf32>
    %c5 = arith.constant 5 : index
    %c0_34 = arith.constant 0 : index
    %c0_35 = arith.constant 0 : index
    %51 = vector.load %arg3[%c5, %c0_34, %c0_35] : memref<8x16x16xf32, #tpu.memory_space<vmem>>, vector<1x16x16xf32>
    %52 = vector.shape_cast %51 : vector<1x16x16xf32> to vector<16x16xf32>
    %53 = vector.extract_strided_slice %45 {offsets = [0, 128], sizes = [16, 128], strides = [1, 1]} : vector<16x512xf32> to vector<16x128xf32>
    %cst_36 = arith.constant dense<0.000000e+00> : vector<16x128xf32>
    %54 = tpu.matmul %52, %53, %cst_36 {dimension_numbers = #tpu.dot_dimension_numbers<[1], [0], [0], [1], [0, 0, 1, 1], [], []>} : vector<16x16xf32>, vector<16x128xf32>, vector<16x128xf32> -> vector<16x128xf32>
    %55 = arith.addf %50, %54 : vector<16x128xf32>
    %c6 = arith.constant 6 : index
    %c0_37 = arith.constant 0 : index
    %c0_38 = arith.constant 0 : index
    %56 = vector.load %arg3[%c6, %c0_37, %c0_38] : memref<8x16x16xf32, #tpu.memory_space<vmem>>, vector<1x16x16xf32>
    %57 = vector.shape_cast %56 : vector<1x16x16xf32> to vector<16x16xf32>
    %58 = vector.extract_strided_slice %45 {offsets = [0, 256], sizes = [16, 128], strides = [1, 1]} : vector<16x512xf32> to vector<16x128xf32>
    %cst_39 = arith.constant dense<0.000000e+00> : vector<16x128xf32>
    %59 = tpu.matmul %57, %58, %cst_39 {dimension_numbers = #tpu.dot_dimension_numbers<[1], [0], [0], [1], [0, 0, 1, 1], [], []>} : vector<16x16xf32>, vector<16x128xf32>, vector<16x128xf32> -> vector<16x128xf32>
    %60 = arith.addf %55, %59 : vector<16x128xf32>
    %c7 = arith.constant 7 : index
    %c0_40 = arith.constant 0 : index
    %c0_41 = arith.constant 0 : index
    %61 = vector.load %arg3[%c7, %c0_40, %c0_41] : memref<8x16x16xf32, #tpu.memory_space<vmem>>, vector<1x16x16xf32>
    %62 = vector.shape_cast %61 : vector<1x16x16xf32> to vector<16x16xf32>
    %63 = vector.extract_strided_slice %45 {offsets = [0, 384], sizes = [16, 128], strides = [1, 1]} : vector<16x512xf32> to vector<16x128xf32>
    %cst_42 = arith.constant dense<0.000000e+00> : vector<16x128xf32>
    %64 = tpu.matmul %62, %63, %cst_42 {dimension_numbers = #tpu.dot_dimension_numbers<[1], [0], [0], [1], [0, 0, 1, 1], [], []>} : vector<16x16xf32>, vector<16x128xf32>, vector<16x128xf32> -> vector<16x128xf32>
    %65 = arith.addf %60, %64 : vector<16x128xf32>
    %cst_43 = arith.constant 0.000000e+00 : f32
    %66 = vector.broadcast %cst_43 : f32 to vector<16x128xf32>
    %67 = arith.maximumf %65, %66 : vector<16x128xf32>
    %68 = arith.truncf %67 : vector<16x128xf32> to vector<16x128xbf16>
    %c0_44 = arith.constant 0 : index
    %c1408 = arith.constant 1408 : index
    %69 = vector.load %arg1[%c0_44, %c1408] : memref<128x1536xbf16, #tpu.memory_space<vmem>>, vector<128x128xbf16>
    %cst_45 = arith.constant dense<0.000000e+00> : vector<16x128xf32>
    %70 = tpu.matmul %68, %69, %cst_45 {dimension_numbers = #tpu.dot_dimension_numbers<[1], [0], [0], [1], [0, 0, 1, 1], [], []>} : vector<16x128xbf16>, vector<128x128xbf16>, vector<16x128xf32> -> vector<16x128xf32>
    %c0_46 = arith.constant 0 : index
    %c384 = arith.constant 384 : index
    %71 = vector.load %arg2[%c0_46, %c384] : memref<1x512xf32, #tpu.memory_space<vmem>>, vector<1x128xf32>
    %72 = vector.broadcast %71 : vector<1x128xf32> to vector<16x128xf32>
    %73 = arith.addf %70, %72 : vector<16x128xf32>
    %c0_47 = arith.constant 0 : index
    %c0_48 = arith.constant 0 : index
    %74 = vector.load %arg4[%c0_47, %c0_48] : memref<16x128xf32, #tpu.memory_space<vmem>>, vector<16x128xf32>
    tpu.vector_store %arg4[%c0_47, %c0_48], %73 {strides = array<i32>} : memref<16x128xf32, #tpu.memory_space<vmem>>, vector<16x128xf32>,
    return
  }
}

</mosaic_0001>

<bundles_post_ra>
// kernel: _forward_impl.1
= control target key start
LH: loop header
LB: loop body
LE: loop exit
PB: predicated region body
PF: predicated region fallthrough
CT: control target
= control target key end

     0   :  { %9 = vsyncpa [#allocation3], 0  ;;  %s1701_s18 = smov [#allocation2]   ;;  %s1702_s20 = smov 768   ;;  %s1832_s0 = inlined_call_operand.vmem [shape: bf16[16,128], index: 0, kind: input, shape index: {}]   ;;  %s1833_s1 = inlined_call_operand.hbm [shape: bf16[128,1536], index: 1, kind: input, shape index: {}]   ;;  %s1834_s2 = inlined_call_operand.vmem [shape: f32[1,512], index: 2, kind: input, shape index: {}]   ;;  %s1835_s3 = inlined_call_operand.vmem [shape: f32[8,16,16], index: 3, kind: input, shape index: {}]   ;;  %s1836_s4 = inlined_call_operand.vmem [shape: f32[16,128], index: 4, kind: output, shape index: {}]  }
   0x1   :  { %s16_s17 = sshll.u32 %s1833_s1, 4  ;;  %s18_s19 = sshll.u32 %s1701_s18, 4  ;;  %s17_s17 = int_to_ptr.hbm [resolvable:$true] %s16_s17  ;;  %s19_s19 = int_to_ptr.vmem [resolvable:$true] %s18_s19 }
   0x2   :  { %s1703_s21 = smov 48  }
   0x3   :  { %24 = dma.hbm_to_vmem [thread:$0]  %s17_s17, 12288, %s19_s19, [#allocation3], %s1702_s20, %s1702_s20, %s1703_s21  }
   0x4   :  { %1699 = dma.done.wait [#allocation3], 12288  }
   0x5   :  { %1700 = vsyncadd [#allocation3], 4294955008  ;;  %v1187_v0 = vld [vmem:[#allocation2 + $0x2a0] sm:$0xf]  ;;  %v1579_v1 = vld [vmem:[#allocation2 + $0x2cc] sm:$0xf0] }
   0x6   :  { %v1183_v2 = vld [vmem:[#allocation2 + $0x240] sm:$0xf]  ;;  %v1188_v3 = vor.u32 %v1579_v1, %v1187_v0  ;;  %v1578_v4 = vld [vmem:[#allocation2 + $0x26c] sm:$0xf0]  ;;  %v1219_v8 = vld [vmem:[#allocation2 + $0x2b4] sm:$0xf] }
   0x7   :  { %v1184_v5 = vor.u32 %v1578_v4, %v1183_v2  ;;  %v1179_v6 = vld [vmem:[#allocation2 + $0x1e0] sm:$0xf]  ;;  %v1577_v7 = vld [vmem:[#allocation2 + $0x20c] sm:$0xf0]  ;;  %v1587_v9 = vld [vmem:[#allocation2 + $0x2e0] sm:$0xf0] }
   0x8   :  { %109 = vmatpush.bf16.msra.mxu0 %v1188_v3  ;;  %v1215_v10 = vld [vmem:[#allocation2 + $0x254] sm:$0xf]  ;;  %v1586_v11 = vld [vmem:[#allocation2 + $0x280] sm:$0xf0]  ;;  %v1180_v12 = vor.u32 %v1577_v7, %v1179_v6  ;;  %v1175_v13 = vld [vmem:[#allocation2 + $0x180] sm:$0xf]  ;;  %v1220_v14 = vor.u32 %v1587_v9, %v1219_v8 }
   0x9   :  { %v1576_v15 = vld [vmem:[#allocation2 + $0x1ac] sm:$0xf0]  ;;  %v1335_v16 = vld [vmem:[#allocation2 + $0x2a4] sm:$0xf]  ;;  %v1618_v17 = vld [vmem:[#allocation2 + $0x2d0] sm:$0xf0]  ;;  %v1216_v18 = vor.u32 %v1586_v11, %v1215_v10 }
   0xa   :  { %194 = vmatpush.bf16.msra.mxu1 %v1220_v14  ;;  %v1336_v19 = vor.u32 %v1618_v17, %v1335_v16  ;;  %v1616_v20 = vld [vmem:[#allocation2 + $0x2a8] sm:$0xf]  ;;  %v1337_v21 = vld [vmem:[#allocation2 + $0x2d4] sm:$0xf0]  ;;  %v1211_v22 = vld [vmem:[#allocation2 + $0x1f4] sm:$0xf]  ;;  %v1176_v25 = vor.u32 %v1576_v15, %v1175_v13 }
   0xb   :  { %v1585_v23 = vld [vmem:[#allocation2 + $0x220] sm:$0xf0]  ;;  %v1340_v24 = vor.u32 %v1616_v20, %v1337_v21  ;;  %v1614_v27 = vld [vmem:[#allocation2 + $0x270] sm:$0xf0]  ;;  %v1612_v28 = vld [vmem:[#allocation2 + $0x248] sm:$0xf] }
   0xc   :  { %110 = vmatpush.bf16.msra.mxu0 %v1184_v5  ;;  %400 = vmatpush.bf16.msra.mxu2 %v1336_v19  ;;  %v1319_v26 = vld [vmem:[#allocation2 + $0x244] sm:$0xf]  ;;  %v1171_v29 = vld [vmem:[#allocation2 + $0x120] sm:$0xf]  ;;  %v1575_v30 = vld [vmem:[#allocation2 + $0x14c] sm:$0xf0]  ;;  %v1212_v33 = vor.u32 %v1585_v23, %v1211_v22 }
   0xd   :  { %414 = vmatpush.bf16.msra.mxu3 %v1340_v24  ;;  %v1320_v31 = vor.u32 %v1614_v27, %v1319_v26  ;;  %v1321_v32 = vld [vmem:[#allocation2 + $0x274] sm:$0xf0]  ;;  %v1207_v34 = vld [vmem:[#allocation2 + $0x194] sm:$0xf]  ;;  %v1584_v35 = vld [vmem:[#allocation2 + $0x1c0] sm:$0xf0]  ;;  %v1172_v41 = vor.u32 %v1575_v30, %v1171_v29 }
   0xe   :  { %195 = vmatpush.bf16.msra.mxu1 %v1216_v18  ;;  %v1324_v36 = vor.u32 %v1612_v28, %v1321_v32  ;;  %v1303_v37 = vld [vmem:[#allocation2 + $0x1e4] sm:$0xf]  ;;  %v1610_v38 = vld [vmem:[#allocation2 + $0x210] sm:$0xf0]  ;;  %v1608_v39 = vld [vmem:[#allocation2 + $0x1e8] sm:$0xf]  ;;  %v1208_v48 = vor.u32 %v1584_v35, %v1207_v34 }
   0xf   :  { %v1305_v40 = vld [vmem:[#allocation2 + $0x214] sm:$0xf0]  ;;  %v1167_v42 = vld [vmem:[#allocation2 + $0xc0] sm:$0xf]  ;;  %v1304_v43 = vor.u32 %v1610_v38, %v1303_v37  ;;  %v1574_v44 = vld [vmem:[#allocation2 + $0xec] sm:$0xf0] }
  0x10   :  { %111 = vmatpush.bf16.msra.mxu0 %v1180_v12  ;;  %401 = vmatpush.bf16.msra.mxu2 %v1320_v31  ;;  %v1308_v45 = vor.u32 %v1608_v39, %v1305_v40  ;;  %v1287_v46 = vld [vmem:[#allocation2 + $0x184] sm:$0xf]  ;;  %v1606_v47 = vld [vmem:[#allocation2 + $0x1b0] sm:$0xf0]  ;;  %v1604_v49 = vld [vmem:[#allocation2 + $0x188] sm:$0xf]  ;;  %v1168_v53 = vor.u32 %v1574_v44, %v1167_v42 }
  0x11   :  { %415 = vmatpush.bf16.msra.mxu3 %v1324_v36  ;;  %v1289_v50 = vld [vmem:[#allocation2 + $0x1b4] sm:$0xf0]  ;;  %v1203_v51 = vld [vmem:[#allocation2 + $0x134] sm:$0xf]  ;;  %v1583_v52 = vld [vmem:[#allocation2 + $0x160] sm:$0xf0]  ;;  %v1288_v55 = vor.u32 %v1606_v47, %v1287_v46 }
  0x12   :  { %196 = vmatpush.bf16.msra.mxu1 %v1212_v33  ;;  %v1163_v54 = vld [vmem:[#allocation2 + $0x60] sm:$0xf]  ;;  %v1573_v56 = vld [vmem:[#allocation2 + $0x8c] sm:$0xf0]  ;;  %v1292_v57 = vor.u32 %v1604_v49, %v1289_v50  ;;  %v1204_v58 = vor.u32 %v1583_v52, %v1203_v51  ;;  %v1199_v59 = vld [vmem:[#allocation2 + $0xd4] sm:$0xf] }
  0x13   :  { %v1582_v60 = vld [vmem:[#allocation2 + $0x100] sm:$0xf0]  ;;  %v1164_v61 = vor.u32 %v1573_v56, %v1163_v54  ;;  %v1159_v62 = vld [vmem:[#allocation2] sm:$0xf]  ;;  %v1572_v63 = vld [vmem:[#allocation2 + $0x2c] sm:$0xf0] }
  0x14   :  { %112 = vmatpush.bf16.msra.mxu0 %v1176_v25  ;;  %402 = vmatpush.bf16.msra.mxu2 %v1304_v43  ;;  %v1343_v0 = vld [vmem:[#allocation2 + $0x2ac] sm:$0xf]  ;;  %v1619_v1 = vld [vmem:[#allocation2 + $0x2d8] sm:$0xf0]  ;;  %v1200_v2 = vor.u32 %v1582_v60, %v1199_v59  ;;  %v1195_v3 = vld [vmem:[#allocation2 + $0x74] sm:$0xf]  ;;  %v1160_v5 = vor.u32 %v1572_v63, %v1159_v62 }
  0x15   :  { %416 = vmatpush.bf16.msra.mxu3 %v1308_v45  ;;  %v1581_v4 = vld [vmem:[#allocation2 + $0xa0] sm:$0xf0]  ;;  %v1344_v6 = vor.u32 %v1619_v1, %v1343_v0  ;;  %v1327_v7 = vld [vmem:[#allocation2 + $0x24c] sm:$0xf]  ;;  %v1615_v8 = vld [vmem:[#allocation2 + $0x278] sm:$0xf0] }
  0x16   :  { %197 = vmatpush.bf16.msra.mxu1 %v1208_v48  ;;  %v1196_v9 = vor.u32 %v1581_v4, %v1195_v3  ;;  %v1571_v10 = vld [vmem:[%s1832_s0] sm:$0xff]  ;;  %v1191_v11 = vld [vmem:[#allocation2 + $0x14] sm:$0xf]  ;;  %v1328_v13 = vor.u32 %v1615_v8, %v1327_v7  ;;  %v1311_v14 = vld [vmem:[#allocation2 + $0x1ec] sm:$0xf]  ;;  %vm458_vm0 = vcmask 130048  }
  0x17   :  { %v1580_v12 = vld [vmem:[#allocation2 + $0x40] sm:$0xf0]  ;;  %v1611_v15 = vld [vmem:[#allocation2 + $0x218] sm:$0xf0]  ;;  %v1295_v18 = vld [vmem:[#allocation2 + $0x18c] sm:$0xf] }
  0x18   :  { %113 = vmatpush.bf16.msra.mxu0 %v1172_v41  ;;  %403 = vmatpush.bf16.msra.mxu2 %v1288_v55  ;;  %v1192_v16 = vor.u32 %v1580_v12, %v1191_v11  ;;  %v1312_v17 = vor.u32 %v1611_v15, %v1311_v14  ;;  %v1607_v19 = vld [vmem:[#allocation2 + $0x1b8] sm:$0xf0]  ;;  %v1271_v21 = vld [vmem:[#allocation2 + $0x124] sm:$0xf]  ;;  %v1602_v22 = vld [vmem:[#allocation2 + $0x150] sm:$0xf0] }
  0x19   :  { %417 = vmatpush.bf16.msra.mxu3 %v1292_v57  ;;  %v1296_v20 = vor.u32 %v1607_v19, %v1295_v18  ;;  %v1600_v23 = vld [vmem:[#allocation2 + $0x128] sm:$0xf]  ;;  %v1272_v24 = vor.u32 %v1602_v22, %v1271_v21  ;;  %v1273_v25 = vld [vmem:[#allocation2 + $0x154] sm:$0xf0]  ;;  %v1279_v26 = vld [vmem:[#allocation2 + $0x12c] sm:$0xf] }
  0x1a   :  { %198 = vmatpush.bf16.msra.mxu1 %v1204_v58  ;;  %v1603_v27 = vld [vmem:[#allocation2 + $0x158] sm:$0xf0]  ;;  %v1276_v28 = vor.u32 %v1600_v23, %v1273_v25  ;;  %v1617_v30 = vld [vmem:[#allocation2 + $0x2b0] sm:$0xf]  ;;  %v1345_v31 = vld [vmem:[#allocation2 + $0x2dc] sm:$0xf0] }
  0x1b   :  { %v1280_v29 = vor.u32 %v1603_v27, %v1279_v26  ;;  %v1348_v32 = vor.u32 %v1617_v30, %v1345_v31  ;;  %v1255_v33 = vld [vmem:[#allocation2 + $0xc4] sm:$0xf]  ;;  %v1598_v34 = vld [vmem:[#allocation2 + $0xf0] sm:$0xf0]  ;;  %v1596_v35 = vld [vmem:[#allocation2 + $0xc8] sm:$0xf] }
  0x1c   :  { %114 = vmatpush.bf16.msra.mxu0 %v1168_v53  ;;  %404 = vmatpush.bf16.msra.mxu2 %v1272_v24  ;;  %v1256_v36 = vor.u32 %v1598_v34, %v1255_v33  ;;  %v1257_v37 = vld [vmem:[#allocation2 + $0xf4] sm:$0xf0]  ;;  %v1263_v38 = vld [vmem:[#allocation2 + $0xcc] sm:$0xf]  ;;  %v1599_v39 = vld [vmem:[#allocation2 + $0xf8] sm:$0xf0] }
  0x1d   :  { %418 = vmatpush.bf16.msra.mxu3 %v1276_v28  ;;  %v1260_v40 = vor.u32 %v1596_v35, %v1257_v37  ;;  %v1264_v41 = vor.u32 %v1599_v39, %v1263_v38  ;;  %v1613_v42 = vld [vmem:[#allocation2 + $0x250] sm:$0xf]  ;;  %v1329_v43 = vld [vmem:[#allocation2 + $0x27c] sm:$0xf0]  ;;  %v1239_v45 = vld [vmem:[#allocation2 + $0x64] sm:$0xf] }
  0x1e   :  { %199 = vmatpush.bf16.msra.mxu1 %v1200_v2  ;;  %v1332_v44 = vor.u32 %v1613_v42, %v1329_v43  ;;  %v1594_v46 = vld [vmem:[#allocation2 + $0x90] sm:$0xf0]  ;;  %v1592_v47 = vld [vmem:[#allocation2 + $0x68] sm:$0xf]  ;;  %v1241_v49 = vld [vmem:[#allocation2 + $0x94] sm:$0xf0] }
  0x1f   :  { %v1240_v48 = vor.u32 %v1594_v46, %v1239_v45  ;;  %v1247_v50 = vld [vmem:[#allocation2 + $0x6c] sm:$0xf]  ;;  %v1595_v51 = vld [vmem:[#allocation2 + $0x98] sm:$0xf0]  ;;  %v1244_v52 = vor.u32 %v1592_v47, %v1241_v49  ;;  %v1609_v54 = vld [vmem:[#allocation2 + $0x1f0] sm:$0xf] }
  0x20   :  { %115 = vmatpush.bf16.msra.mxu0 %v1164_v61  ;;  %405 = vmatpush.bf16.msra.mxu2 %v1256_v36  ;;  %v1248_v53 = vor.u32 %v1595_v51, %v1247_v50  ;;  %v1313_v55 = vld [vmem:[#allocation2 + $0x21c] sm:$0xf0]  ;;  %v1223_v57 = vld [vmem:[#allocation2 + $0x4] sm:$0xf]  ;;  %v1590_v58 = vld [vmem:[#allocation2 + $0x30] sm:$0xf0] }
  0x21   :  { %419 = vmatpush.bf16.msra.mxu3 %v1260_v40  ;;  %v1316_v56 = vor.u32 %v1609_v54, %v1313_v55  ;;  %v1588_v59 = vld [vmem:[#allocation2 + $0x8] sm:$0xf]  ;;  %v1224_v60 = vor.u32 %v1590_v58, %v1223_v57  ;;  %v1225_v61 = vld [vmem:[#allocation2 + $0x34] sm:$0xf0]  ;;  %v1231_v62 = vld [vmem:[#allocation2 + $0xc] sm:$0xf] }
  0x22   :  { %200 = vmatpush.bf16.msra.mxu1 %v1196_v9  ;;  %v1591_v63 = vld [vmem:[#allocation2 + $0x38] sm:$0xf0]  ;;  %v1228_v0 = vor.u32 %v1588_v59, %v1225_v61  ;;  %v1605_v2 = vld [vmem:[#allocation2 + $0x190] sm:$0xf]  ;;  %v1297_v3 = vld [vmem:[#allocation2 + $0x1bc] sm:$0xf0] }
  0x23   :  { %v1232_v1 = vor.u32 %v1591_v63, %v1231_v62  ;;  %v1300_v4 = vor.u32 %v1605_v2, %v1297_v3  ;;  %v1597_v8 = vld [vmem:[#allocation2 + $0xd0] sm:$0xf]  ;;  %v1265_v9 = vld [vmem:[#allocation2 + $0xfc] sm:$0xf0]  ;;  %v1356_v36 = vld [vmem:[%s1835_s3 + $0x28] sm:$0xff] }
  0x24   :  { %116 = vmatpush.bf16.msra.mxu0 %v1160_v5  ;;  %406 = vmatpush.bf16.msra.mxu2 %v1240_v48  ;;  %v1601_v5 = vld [vmem:[#allocation2 + $0x130] sm:$0xf]  ;;  %v1249_v12 = vld [vmem:[#allocation2 + $0x9c] sm:$0xf0]  ;;  %v457_v37 = vld [vmem:[%s1835_s3 + $0x8] sm:$0xff] }
  0x25   :  { %420 = vmatpush.bf16.msra.mxu3 %v1244_v52  ;;  %v1593_v11 = vld [vmem:[#allocation2 + $0x70] sm:$0xf]  ;;  %v1233_v15 = vld [vmem:[#allocation2 + $0x3c] sm:$0xf0]  ;;  %v1352_v40 = vld [vmem:[%s1835_s3 + $0x18] sm:$0xff] }
  0x26   :  { %201 = vmatpush.bf16.msra.mxu1 %v1192_v16  ;;  %v1589_v14 = vld [vmem:[#allocation2 + $0x10] sm:$0xf]  ;;  %v1671_v18 = vld [vmem:[%s1834_s2] ss:$0 sm:$0xff]  ;;  %v1360_v42 = vld [vmem:[%s1835_s3 + $0x38] sm:$0xff] }
  0x27   :  { %117 = vmatmul.bf16.vlgmr.msra.gmra.mxu0 %v1571_v10  ;;  %v1268_v10 = vor.u32 %v1597_v8, %v1265_v9  ;;  %v1236_v16 = vor.u32 %v1589_v14, %v1233_v15  ;;  %v1355_v31 = vld [vmem:[%s1835_s3 + $0x20] sm:$0xff]  ;;  %v1351_v39 = vld [vmem:[%s1835_s3 + $0x10] sm:$0xff]  ;;  %v1393_v43 = vld [vmem:[#allocation2 + $0x2c8] sm:$0xf] }
  0x28   :  { %428 = vmatpush.bf16.msrb.mxu0 %v1344_v6  ;;  %407 = vmatpush.bf16.msra.mxu2 %v1224_v60  ;;  %v1281_v6 = vld [vmem:[#allocation2 + $0x15c] sm:$0xf0]  ;;  %v1389_v45 = vld [vmem:[#allocation2 + $0x268] sm:$0xf]  ;;  %v1626_v47 = vld [vmem:[#allocation2 + $0x294] sm:$0xf0] }
  0x29   :  { %421 = vmatpush.bf16.msra.mxu3 %v1228_v0  ;;  %v1284_v7 = vor.u32 %v1601_v5, %v1281_v6  ;;  %v456_v33 = vld [vmem:[%s1835_s3] sm:$0xff]  ;;  %v1390_v48 = vor.u32 %v1626_v47, %v1389_v45  ;;  %v1385_v49 = vld [vmem:[#allocation2 + $0x208] sm:$0xf]  ;;  %v1625_v50 = vld [vmem:[#allocation2 + $0x234] sm:$0xf0] }
  0x2a   :  { %442 = vmatpush.bf16.msrb.mxu1 %v1348_v32  ;;  %v1381_v51 = vld [vmem:[#allocation2 + $0x1a8] sm:$0xf]  ;;  %v1386_v52 = vor.u32 %v1625_v50, %v1385_v49  ;;  %v1509_v55 = vld [vmem:[#allocation2 + $0x2b8] sm:$0xf]  ;;  %v1656_v57 = vld [vmem:[#allocation2 + $0x2bc] sm:$0xf] }
  0x2b   :  { %v1511_v59 = vld [vmem:[#allocation2 + $0x2e8] sm:$0xf0]  ;;  %v1517_v60 = vld [vmem:[#allocation2 + $0x2c0] sm:$0xf]  ;;  %v1659_v61 = vld [vmem:[#allocation2 + $0x2ec] sm:$0xf0] }
  0x2c   :  { %429 = vmatpush.bf16.msrb.mxu0 %v1328_v13  ;;  %v1252_v13 = vor.u32 %v1593_v11, %v1249_v12  ;;  %v1514_v62 = vor.u32 %v1656_v57, %v1511_v59  ;;  %v1518_v63 = vor.u32 %v1659_v61, %v1517_v60  ;;  %v1377_v0 = vld [vmem:[#allocation2 + $0x148] sm:$0xf]  ;;  %v1493_v3 = vld [vmem:[#allocation2 + $0x258] sm:$0xf]  ;;  %v1652_v5 = vld [vmem:[#allocation2 + $0x25c] sm:$0xf] }
  0x2d   :  { %v1501_v8 = vld [vmem:[#allocation2 + $0x260] sm:$0xf]  ;;  %v1655_v9 = vld [vmem:[#allocation2 + $0x28c] sm:$0xf0]  ;;  %v1373_v12 = vld [vmem:[#allocation2 + $0xe8] sm:$0xf] }
  0x2e   :  { %443 = vmatpush.bf16.msrb.mxu1 %v1332_v44  ;;  %v1627_v44 = vld [vmem:[#allocation2 + $0x2f4] sm:$0xf0]  ;;  %v1502_v11 = vor.u32 %v1655_v9, %v1501_v8  ;;  %v1447_v45 = vld [vmem:[#allocation2 + $0x168] sm:$0xf0]  ;;  %v1643_v47 = vld [vmem:[#allocation2 + $0x16c] sm:$0xf0] }
  0x2f   :  { %v1394_v46 = vor.u32 %v1627_v44, %v1393_v43  ;;  %v1477_v15 = vld [vmem:[#allocation2 + $0x1f8] sm:$0xf]  ;;  %v1640_v43 = vld [vmem:[#allocation2 + $0x13c] sm:$0xf]  ;;  %v1437_v59 = vld [vmem:[#allocation2 + $0xe0] sm:$0xf] }
  0x30   :  { %430 = vmatpush.bf16.msrb.mxu0 %v1312_v17  ;;  %v1450_v49 = vor.u32 %v1640_v43, %v1447_v45  ;;  %v1639_v60 = vld [vmem:[#allocation2 + $0x10c] sm:$0xf0] }
  0x31   :  { %v1635_v8 = vld [vmem:[#allocation2 + $0xac] sm:$0xf0] }
  0x32   :  { %444 = vmatpush.bf16.msrb.mxu1 %v1316_v56  ;;  %v1658_v56 = vld [vmem:[#allocation2 + $0x2e4] sm:$0xf0] }
  0x33   :  { %v1510_v58 = vor.u32 %v1658_v56, %v1509_v55  ;;  %v1638_v55 = vld [vmem:[#allocation2 + $0x104] sm:$0xf0]  ;;  %v1636_v56 = vld [vmem:[#allocation2 + $0xdc] sm:$0xf] }
  0x34   :  { %431 = vmatpush.bf16.msrb.mxu0 %v1296_v20 }
  0x36   :  { %445 = vmatpush.bf16.msrb.mxu1 %v1300_v4  ;;  %v1654_v4 = vld [vmem:[#allocation2 + $0x284] sm:$0xf0] }
  0x37   :  { %v1494_v6 = vor.u32 %v1654_v4, %v1493_v3  ;;  %v1634_v3 = vld [vmem:[#allocation2 + $0xa4] sm:$0xf0]  ;;  %v1632_v4 = vld [vmem:[#allocation2 + $0x7c] sm:$0xf] }
  0x38   :  { %432 = vmatpush.bf16.msrb.mxu0 %v1280_v29 }
  0x3a   :  { %446 = vmatpush.bf16.msrb.mxu1 %v1284_v7  ;;  %v1495_v7 = vld [vmem:[#allocation2 + $0x288] sm:$0xf0] }
  0x3c   :  { %433 = vmatpush.bf16.msrb.mxu0 %v1264_v41  ;;  %v1359_v41 = vld [vmem:[%s1835_s3 + $0x30] sm:$0xff] }
  0x3e   :  { %447 = vmatpush.bf16.msrb.mxu1 %v1268_v10  ;;  %v1498_v10 = vor.u32 %v1652_v5, %v1495_v7  ;;  %v1421_v7 = vld [vmem:[#allocation2 + $0x80] sm:$0xf] }
  0x40   :  { %434 = vmatpush.bf16.msrb.mxu0 %v1248_v53  ;;  %v1624_v53 = vld [vmem:[#allocation2 + $0x1d4] sm:$0xf0] }
  0x41   :  { %v1382_v54 = vor.u32 %v1624_v53, %v1381_v51  ;;  %v1657_v51 = vld [vmem:[#allocation2 + $0x2c4] sm:$0xf] }
  0x42   :  { %448 = vmatpush.bf16.msrb.mxu1 %v1252_v13  ;;  %v1622_v13 = vld [vmem:[#allocation2 + $0x114] sm:$0xf0] }
  0x43   :  { %v1374_v14 = vor.u32 %v1622_v13, %v1373_v12  ;;  %v1649_v12 = vld [vmem:[#allocation2 + $0x204] sm:$0xf]  ;;  %v1487_v13 = vld [vmem:[#allocation2 + $0x230] sm:$0xf0] }
  0x44   :  { %435 = vmatpush.bf16.msrb.mxu0 %v1232_v1  ;;  %v1623_v1 = vld [vmem:[#allocation2 + $0x174] sm:$0xf0] }
  0x45   :  { %v1378_v2 = vor.u32 %v1623_v1, %v1377_v0  ;;  %v1503_v0 = vld [vmem:[#allocation2 + $0x290] sm:$0xf0] }
  0x46   :  { %449 = vmatpush.bf16.msrb.mxu1 %v1236_v16  ;;  %v1650_v16 = vld [vmem:[#allocation2 + $0x224] sm:$0xf0] }
  0x48   :  { %663 = vmatpush.bf16.msra.mxu0 %v1394_v46  ;;  %v1453_v46 = vld [vmem:[#allocation2 + $0x140] sm:$0xf] }
  0x49   :  { %v1454_v50 = vor.u32 %v1643_v47, %v1453_v46 }
  0x4c   :  { %664 = vmatpush.bf16.msra.mxu0 %v1390_v48 }
  0x50   :  { %665 = vmatpush.bf16.msra.mxu0 %v1386_v52  ;;  %v1519_v52 = vld [vmem:[#allocation2 + $0x2f0] sm:$0xf0] }
  0x51   :  { %v1522_v53 = vor.u32 %v1657_v51, %v1519_v52 }
  0x54   :  { %666 = vmatpush.bf16.msra.mxu0 %v1382_v54  ;;  %v1429_v54 = vld [vmem:[#allocation2 + $0xd8] sm:$0xf] }
  0x55   :  { %v1430_v57 = vor.u32 %v1638_v55, %v1429_v54 }
  0x58   :  { %667 = vmatpush.bf16.msra.mxu0 %v1378_v2  ;;  %v1413_v2 = vld [vmem:[#allocation2 + $0x78] sm:$0xf] }
  0x59   :  { %v1414_v5 = vor.u32 %v1634_v3, %v1413_v2 }
  0x5c   :  { %668 = vmatpush.bf16.msra.mxu0 %v1374_v14  ;;  %v1490_v14 = vor.u32 %v1649_v12, %v1487_v13  ;;  %v1536_v12 = vld [vmem:[%s1835_s3 + $0x78] sm:$0xff]  ;;  %v1569_v13 = vld [vmem:[#allocation2 + $0x2cc] sm:$0xf] }
  0xa4   :  { %v118_v17 = vpop.f32.mrf.mxu0 }
  0xa5   :  { %v119_v19 = vadd.f32 %v1671_v18, %v118_v17  ;;  %v1648_v17 = vld [vmem:[#allocation2 + $0x1fc] sm:$0xf] }
  0xa7   :  { %v123_v22 = vmax.f32 %v119_v19, 0.0  ;;  %v1479_v19 = vld [vmem:[#allocation2 + $0x228] sm:$0xf0] }
  0xac   :  { %v120_v20 = vpop.f32.mrf.mxu0 }
  0xad   :  { %v121_v21 = vadd.f32 %v1671_v18, %v120_v20  ;;  %v1478_v18 = vor.u32 %v1650_v16, %v1477_v15  ;;  %v1485_v20 = vld [vmem:[#allocation2 + $0x200] sm:$0xf]  ;;  %v1397_v15 = vld [vmem:[#allocation2 + $0x18] sm:$0xf]  ;;  %v1630_v16 = vld [vmem:[#allocation2 + $0x44] sm:$0xf0] }
  0xaf   :  { %v124_v23 = vmax.f32 %v121_v21, 0.0  ;;  %v1651_v21 = vld [vmem:[#allocation2 + $0x22c] sm:$0xf0] }
  0xb1   :  { %v125_v24 = vpack.c.bf16 %v124_v23, %v123_v22  ;;  %v1482_v22 = vor.u32 %v1648_v17, %v1479_v19  ;;  %v1486_v23 = vor.u32 %v1651_v21, %v1485_v20  ;;  %v1628_v17 = vld [vmem:[#allocation2 + $0x1c] sm:$0xf]  ;;  %v1399_v19 = vld [vmem:[#allocation2 + $0x48] sm:$0xf0]  ;;  %v1405_v20 = vld [vmem:[#allocation2 + $0x20] sm:$0xf] }
  0xb2   :  { %v1631_v21 = vld [vmem:[#allocation2 + $0x4c] sm:$0xf0] }
  0xb3   :  { %202 = vmatmul.bf16.vlgmr.msra.gmra.mxu1 %v125_v24  ;;  %408 = vmatmul.bf16.vlgmr.msra.gmra.mxu2 %v125_v24 }
  0xb4   :  { %422 = vmatmul.bf16.vlgmr.msra.gmra.mxu3 %v125_v24  ;;  %436 = vmatmul.bf16.vlgmr.msrb.gmra.mxu0 %v125_v24 }
  0xb5   :  { %869 = vmatpush.bf16.msra.mxu1 %v1510_v58  ;;  %v1431_v58 = vld [vmem:[#allocation2 + $0x108] sm:$0xf0] }
  0xb6   :  { %v1434_v61 = vor.u32 %v1636_v56, %v1431_v58 }
  0xb9   :  { %870 = vmatpush.bf16.msra.mxu1 %v1494_v6  ;;  %v1415_v6 = vld [vmem:[#allocation2 + $0xa8] sm:$0xf0] }
  0xbd   :  { %871 = vmatpush.bf16.msra.mxu1 %v1478_v18  ;;  %v1398_v18 = vor.u32 %v1630_v16, %v1397_v15  ;;  %v1565_v16 = vld [vmem:[#allocation2 + $0x26c] sm:$0xf] }
  0xc3   :  { %450 = vmatmul.bf16.vlgmr.msrb.gmra.mxu1 %v125_v24  ;;  %v1369_v24 = vld [vmem:[#allocation2 + $0x88] sm:$0xf] }
 0x130   :  { %v1738_v25 = vpop.f32.mrf.mxu1 }
 0x131   :  { %v437_v26 = vpop.f32.mrf.mxu0 }
 0x136   :  { %v409_v27 = vpop.f32.mrf.mxu2 }
 0x137   :  { %v423_v28 = vpop.f32.mrf.mxu3 }
 0x138   :  { %v1740_v29 = vpop.f32.mrf.mxu1 }
 0x139   :  { %v439_v30 = vpop.f32.mrf.mxu0 }
 0x13a   :  { %547 = vmatpush.msrb.mxu2 %v439_v30  ;;  %v1646_v30 = vld [vmem:[#allocation2 + $0x1c4] sm:$0xf0] }
 0x13c   :  { %548 = vmatpush.msrb.mxu2 %v437_v26  ;;  %v1621_v26 = vld [vmem:[#allocation2 + $0xb4] sm:$0xf0] }
 0x13d   :  { %1357 = vmatmul.msk.f32.vlgmr.msrb.gmra.mxu2 %vm458_vm0, %v1355_v31  ;;  %v1644_v31 = vld [vmem:[#allocation2 + $0x19c] sm:$0xf] }
 0x13e   :  { %v411_v32 = vpop.f32.mrf.mxu2  ;;  %883 = vmatpush.bf16.msra.mxu2 %v1514_v62  ;;  %v1438_v62 = vor.u32 %v1639_v60, %v1437_v59 }
 0x13f   :  { %479 = vmatpush.msrb.mxu3 %v411_v32  ;;  %v425_v35 = vpop.f32.mrf.mxu3 }
 0x140   :  { %v451_v34 = vpop.f32.mrf.mxu1 }
 0x141   :  { %480 = vmatpush.msrb.mxu3 %v409_v27  ;;  %v1370_v27 = vor.u32 %v1621_v26, %v1369_v24  ;;  %v1645_v24 = vld [vmem:[#allocation2 + $0x1a4] sm:$0xf]  ;;  %v1471_v26 = vld [vmem:[#allocation2 + $0x1d0] sm:$0xf0] }
 0x142   :  { %1349 = vmatmul.msk.f32.vlgmr.msrb.gmra.mxu3 %vm458_vm0, %v456_v33  ;;  %884 = vmatpush.bf16.msra.mxu2 %v1498_v10  ;;  %v1463_v33 = vld [vmem:[#allocation2 + $0x1c8] sm:$0xf0]  ;;  %v1418_v10 = vor.u32 %v1632_v4, %v1415_v6  ;;  %v1531_v6 = vld [vmem:[%s1835_s3 + $0x60] sm:$0xff] }
 0x143   :  { %513 = vmatpush.msra.mxu3 %v425_v35  ;;  %v1647_v35 = vld [vmem:[#allocation2 + $0x1cc] sm:$0xf0]  ;;  %669 = vmatpush.bf16.msra.mxu0 %v1370_v27  ;;  %v1474_v27 = vor.u32 %v1645_v24, %v1471_v26  ;;  %v1553_v26 = vld [vmem:[#allocation2 + $0x14c] sm:$0xf] }
 0x145   :  { %514 = vmatpush.msra.mxu3 %v423_v28  ;;  %1358 = vmatmul.msk.f32.gmra.mxu2 %vm458_vm0, %v1356_v36  ;;  %v1461_v28 = vld [vmem:[#allocation2 + $0x198] sm:$0xf]  ;;  %v1466_v36 = vor.u32 %v1644_v31, %v1463_v33  ;;  %v1637_v33 = vld [vmem:[#allocation2 + $0xe4] sm:$0xf] }
 0x146   :  { %885 = vmatpush.bf16.msra.mxu2 %v1482_v22  ;;  %v1462_v32 = vor.u32 %v1646_v30, %v1461_v28  ;;  %v1402_v22 = vor.u32 %v1628_v17, %v1399_v19  ;;  %v1641_v28 = vld [vmem:[#allocation2 + $0x144] sm:$0xf]  ;;  %v1455_v30 = vld [vmem:[#allocation2 + $0x170] sm:$0xf0]  ;;  %v1666_v17 = vld [vmem:[#allocation2 + $0x298] sm:$0xf0] }
 0x147   :  { %v1458_v31 = vor.u32 %v1641_v28, %v1455_v30  ;;  %v1561_v19 = vld [vmem:[#allocation2 + $0x20c] sm:$0xf] }
 0x148   :  { %v453_v38 = vpop.f32.mrf.mxu1  ;;  %872 = vmatpush.bf16.msra.mxu1 %v1462_v32  ;;  %v1549_v30 = vld [vmem:[#allocation2 + $0xec] sm:$0xf] }
 0x149   :  { %581 = vmatpush.msrb.mxu3 %v453_v38  ;;  %v1365_v38 = vld [vmem:[#allocation2 + $0x28] sm:$0xf] }
 0x14a   :  { %1350 = vmatmul.msk.f32.gmra.mxu3 %vm458_vm0, %v457_v37  ;;  %886 = vmatpush.bf16.msra.mxu2 %v1466_v36  ;;  %v1633_v36 = vld [vmem:[#allocation2 + $0x84] sm:$0xf] }
 0x14b   :  { %582 = vmatpush.msrb.mxu3 %v451_v34  ;;  %v1469_v34 = vld [vmem:[#allocation2 + $0x1a0] sm:$0xf] }
 0x14c   :  { %v1470_v37 = vor.u32 %v1647_v35, %v1469_v34  ;;  %v1439_v34 = vld [vmem:[#allocation2 + $0x110] sm:$0xf0] }
 0x14d   :  { %v1442_v35 = vor.u32 %v1637_v33, %v1439_v34  ;;  %v1545_v33 = vld [vmem:[#allocation2 + $0x8c] sm:$0xf]  ;;  %v1661_v34 = vld [vmem:[#allocation2 + $0xb8] sm:$0xf0] }
 0x14e   :  { %887 = vmatpush.bf16.msra.mxu2 %v1450_v49 }
 0x152   :  { %1353 = vmatmul.msk.f32.vlgmr.msra.gmra.mxu3 %vm458_vm0, %v1351_v39  ;;  %v1620_v39 = vld [vmem:[#allocation2 + $0x54] sm:$0xf0]  ;;  %888 = vmatpush.bf16.msra.mxu2 %v1434_v61 }
 0x153   :  { %897 = vmatpush.bf16.msra.mxu3 %v1518_v63  ;;  %v1653_v63 = vld [vmem:[#allocation2 + $0x264] sm:$0xf] }
 0x154   :  { %v1506_v1 = vor.u32 %v1653_v63, %v1503_v0 }
 0x156   :  { %889 = vmatpush.bf16.msra.mxu2 %v1418_v10  ;;  %v1532_v10 = vld [vmem:[%s1835_s3 + $0x68] sm:$0xff] }
 0x157   :  { %898 = vmatpush.bf16.msra.mxu3 %v1502_v11  ;;  %v1422_v11 = vor.u32 %v1635_v8, %v1421_v7  ;;  %v1524_v7 = vld [vmem:[%s1835_s3 + $0x48] sm:$0xff] }
 0x15a   :  { %1354 = vmatmul.msk.f32.gmra.mxu3 %vm458_vm0, %v1352_v40  ;;  %v1366_v40 = vor.u32 %v1620_v39, %v1365_v38  ;;  %890 = vmatpush.bf16.msra.mxu2 %v1402_v22  ;;  %v1557_v22 = vld [vmem:[#allocation2 + $0x1ac] sm:$0xf] }
 0x15b   :  { %899 = vmatpush.bf16.msra.mxu3 %v1486_v23  ;;  %v1406_v23 = vor.u32 %v1631_v21, %v1405_v20  ;;  %v1665_v20 = vld [vmem:[#allocation2 + $0x238] sm:$0xf0] }
 0x15c   :  { %670 = vmatpush.bf16.msra.mxu0 %v1366_v40  ;;  %v1629_v40 = vld [vmem:[#allocation2 + $0x24] sm:$0xf]  ;;  %v1562_v21 = vor.u32 %v1665_v20, %v1561_v19 }
 0x15f   :  { %900 = vmatpush.bf16.msra.mxu3 %v1470_v37  ;;  %v1423_v37 = vld [vmem:[#allocation2 + $0xb0] sm:$0xf0] }
 0x160   :  { %911 = vmatpush.bf16.msrb.mxu0 %v1522_v53  ;;  %v1426_v38 = vor.u32 %v1633_v36, %v1423_v37  ;;  %v1541_v36 = vld [vmem:[#allocation2 + $0x2c] sm:$0xf]  ;;  %v1660_v37 = vld [vmem:[#allocation2 + $0x58] sm:$0xf0] }
 0x162   :  { %1361 = vmatmul.msk.f32.vlgmr.msrb.gmra.mxu3 %vm458_vm0, %v1359_v41  ;;  %v1445_v41 = vld [vmem:[#allocation2 + $0x138] sm:$0xf] }
 0x163   :  { %901 = vmatpush.bf16.msra.mxu3 %v1454_v50 }
 0x164   :  { %912 = vmatpush.bf16.msrb.mxu0 %v1506_v1  ;;  %v1523_v1 = vld [vmem:[%s1835_s3 + $0x40] sm:$0xff] }
 0x167   :  { %902 = vmatpush.bf16.msra.mxu3 %v1438_v62 }
 0x168   :  { %913 = vmatpush.bf16.msrb.mxu0 %v1490_v14  ;;  %v1667_v14 = vld [vmem:[#allocation2 + $0x2f8] sm:$0xf0] }
 0x169   :  { %v1570_v15 = vor.u32 %v1667_v14, %v1569_v13 }
 0x16a   :  { %1362 = vmatmul.msk.f32.gmra.mxu3 %vm458_vm0, %v1360_v42  ;;  %v1642_v42 = vld [vmem:[#allocation2 + $0x164] sm:$0xf0] }
 0x16b   :  { %v1446_v44 = vor.u32 %v1642_v42, %v1445_v41  ;;  %903 = vmatpush.bf16.msra.mxu3 %v1422_v11  ;;  %v1407_v41 = vld [vmem:[#allocation2 + $0x50] sm:$0xf0]  ;;  %v1672_v42 = vld [vmem:[%s1834_s2 + $0x1] ss:$0 sm:$0xff] }
 0x16c   :  { %914 = vmatpush.bf16.msrb.mxu0 %v1474_v27  ;;  %v204_v45 = vadd.f32 %v1672_v42, %v1738_v25  ;;  %v206_v46 = vadd.f32 %v1672_v42, %v1740_v29  ;;  %v1535_v11 = vld [vmem:[%s1835_s3 + $0x70] sm:$0xff]  ;;  %v1663_v27 = vld [vmem:[#allocation2 + $0x178] sm:$0xf0] }
 0x16d   :  { %873 = vmatpush.bf16.msra.mxu1 %v1446_v44  ;;  %v1410_v44 = vor.u32 %v1629_v40, %v1407_v41  ;;  %v1554_v28 = vor.u32 %v1663_v27, %v1553_v26  ;;  %v1673_v40 = vld [vmem:[%s1834_s2 + $0x2] ss:$0 sm:$0xff] }
 0x16f   :  { %904 = vmatpush.bf16.msra.mxu3 %v1406_v23  ;;  %v1664_v23 = vld [vmem:[#allocation2 + $0x1d8] sm:$0xf0] }
 0x170   :  { %915 = vmatpush.bf16.msrb.mxu0 %v1458_v31  ;;  %v1558_v24 = vor.u32 %v1664_v23, %v1557_v22  ;;  %v1662_v31 = vld [vmem:[#allocation2 + $0x118] sm:$0xf0] }
 0x171   :  { %874 = vmatpush.bf16.msra.mxu1 %v1430_v57 }
 0x174   :  { %916 = vmatpush.bf16.msrb.mxu0 %v1442_v35  ;;  %v1546_v35 = vor.u32 %v1661_v34, %v1545_v33 }
 0x175   :  { %875 = vmatpush.bf16.msra.mxu1 %v1414_v5  ;;  %v1527_v5 = vld [vmem:[%s1835_s3 + $0x50] sm:$0xff] }
 0x178   :  { %917 = vmatpush.bf16.msrb.mxu0 %v1426_v38  ;;  %v1542_v38 = vor.u32 %v1660_v37, %v1541_v36 }
 0x179   :  { %876 = vmatpush.bf16.msra.mxu1 %v1398_v18  ;;  %v1566_v18 = vor.u32 %v1666_v17, %v1565_v16 }
 0x17c   :  { %918 = vmatpush.bf16.msrb.mxu0 %v1410_v44 }
 0x1c0   :  { %v550_v43 = vpop.f32.mrf.mxu2 }
 0x1c5   :  { %v1774_v48 = vpop.f32.mrf.mxu3 }
 0x1c6   :  { %v488_v47 = vadd.f32 %v1774_v48, %v204_v45 }
 0x1c8   :  { %v553_v53 = vpop.f32.mrf.mxu2 }
 0x1cd   :  { %v485_v9 = vpop.f32.mrf.mxu3 }
 0x1ce   :  { %v489_v50 = vadd.f32 %v485_v9, %v206_v46  ;;  %v1528_v9 = vld [vmem:[%s1835_s3 + $0x58] sm:$0xff] }
 0x1d5   :  { %v516_v32 = vpop.f32.mrf.mxu3 }
 0x1d6   :  { %v522_v51 = vadd.f32 %v516_v32, %v488_v47  ;;  %v1550_v32 = vor.u32 %v1662_v31, %v1549_v30 }
 0x1d8   :  { %v556_v54 = vadd.f32 %v550_v43, %v522_v51 }
 0x1dd   :  { %v519_v39 = vpop.f32.mrf.mxu3 }
 0x1de   :  { %v523_v52 = vadd.f32 %v519_v39, %v489_v50 }
 0x1e0   :  { %v557_v55 = vadd.f32 %v553_v53, %v523_v52 }
 0x1e5   :  { %v584_v49 = vpop.f32.mrf.mxu3 }
 0x1e6   :  { %v590_v56 = vadd.f32 %v584_v49, %v556_v54 }
 0x1e8   :  { %v592_v59 = vmax.f32 %v590_v56, 0.0 }
 0x1ed   :  { %v587_v57 = vpop.f32.mrf.mxu3 }
 0x1ee   :  { %v591_v58 = vadd.f32 %v587_v57, %v557_v55 }
 0x1f0   :  { %v593_v60 = vmax.f32 %v591_v58, 0.0 }
 0x1f2   :  { %v594_v61 = vpack.c.bf16 %v593_v60, %v592_v59 }
 0x1f4   :  { %671 = vmatmul.bf16.vlgmr.msra.gmra.mxu0 %v594_v61  ;;  %877 = vmatmul.bf16.vlgmr.msra.gmra.mxu1 %v594_v61 }
 0x1f5   :  { %891 = vmatmul.bf16.vlgmr.msra.gmra.mxu2 %v594_v61  ;;  %905 = vmatmul.bf16.vlgmr.msra.gmra.mxu3 %v594_v61 }
 0x204   :  { %919 = vmatmul.bf16.vlgmr.msrb.gmra.mxu0 %v594_v61 }
 0x271   :  { %v1782_v25 = vpop.f32.mrf.mxu0  ;;  %v878_v29 = vpop.f32.mrf.mxu1 }
 0x272   :  { %v673_v42 = vadd.f32 %v1673_v40, %v1782_v25  ;;  %v1674_v25 = vld [vmem:[%s1834_s2 + $0x3] ss:$0 sm:$0xff] }
 0x278   :  { %v892_v48 = vpop.f32.mrf.mxu2  ;;  %v906_v62 = vpop.f32.mrf.mxu3 }
 0x279   :  { %v1784_v63 = vpop.f32.mrf.mxu0  ;;  %v880_v0 = vpop.f32.mrf.mxu1 }
 0x27a   :  { %948 = vmatpush.msrb.mxu1 %v880_v0  ;;  %v675_v49 = vadd.f32 %v1673_v40, %v1784_v63 }
 0x27c   :  { %949 = vmatpush.msrb.mxu1 %v878_v29 }
 0x27d   :  { %1525 = vmatmul.msk.f32.vlgmr.msrb.gmra.mxu1 %vm458_vm0, %v1523_v1 }
 0x280   :  { %v894_v2 = vpop.f32.mrf.mxu2  ;;  %v908_v3 = vpop.f32.mrf.mxu3 }
 0x281   :  { %982 = vmatpush.msrb.mxu2 %v894_v2  ;;  %1016 = vmatpush.msrb.mxu3 %v908_v3  ;;  %v920_v4 = vpop.f32.mrf.mxu0 }
 0x283   :  { %983 = vmatpush.msrb.mxu2 %v892_v48  ;;  %1017 = vmatpush.msrb.mxu3 %v906_v62 }
 0x284   :  { %1529 = vmatmul.msk.f32.vlgmr.msrb.gmra.mxu2 %vm458_vm0, %v1527_v5  ;;  %1533 = vmatmul.msk.f32.vlgmr.msrb.gmra.mxu3 %vm458_vm0, %v1531_v6 }
 0x285   :  { %1526 = vmatmul.msk.f32.gmra.mxu1 %vm458_vm0, %v1524_v7  ;;  %1132 = vmatpush.bf16.msra.mxu2 %v1570_v15 }
 0x289   :  { %v922_v8 = vpop.f32.mrf.mxu0  ;;  %1133 = vmatpush.bf16.msra.mxu2 %v1566_v18 }
 0x28a   :  { %1050 = vmatpush.msra.mxu1 %v922_v8 }
 0x28c   :  { %1530 = vmatmul.msk.f32.gmra.mxu2 %vm458_vm0, %v1528_v9  ;;  %1051 = vmatpush.msra.mxu1 %v920_v4 }
 0x28d   :  { %1534 = vmatmul.msk.f32.gmra.mxu3 %vm458_vm0, %v1532_v10  ;;  %1537 = vmatmul.msk.f32.vlgmr.msra.gmra.mxu1 %vm458_vm0, %v1535_v11 }
 0x28e   :  { %1134 = vmatpush.bf16.msra.mxu2 %v1562_v21 }
 0x292   :  { %1135 = vmatpush.bf16.msra.mxu2 %v1558_v24 }
 0x295   :  { %1538 = vmatmul.msk.f32.gmra.mxu1 %vm458_vm0, %v1536_v12 }
 0x296   :  { %1136 = vmatpush.bf16.msra.mxu2 %v1554_v28 }
 0x29a   :  { %1137 = vmatpush.bf16.msra.mxu2 %v1550_v32 }
 0x29e   :  { %1138 = vmatpush.bf16.msra.mxu2 %v1546_v35 }
 0x2a2   :  { %1139 = vmatpush.bf16.msra.mxu2 %v1542_v38 }
 0x2fa   :  { %v951_v39 = vpop.f32.mrf.mxu1 }
 0x2fb   :  { %v957_v45 = vadd.f32 %v951_v39, %v673_v42 }
 0x302   :  { %v954_v41 = vpop.f32.mrf.mxu1 }
 0x303   :  { %v958_v50 = vadd.f32 %v954_v41, %v675_v49 }
 0x307   :  { %v985_v43 = vpop.f32.mrf.mxu2  ;;  %v1019_v44 = vpop.f32.mrf.mxu3 }
 0x308   :  { %v991_v46 = vadd.f32 %v985_v43, %v957_v45 }
 0x30a   :  { %v1053_v47 = vpop.f32.mrf.mxu1  ;;  %v1025_v51 = vadd.f32 %v1019_v44, %v991_v46 }
 0x30c   :  { %v1059_v55 = vadd.f32 %v1053_v47, %v1025_v51 }
 0x30e   :  { %v1061_v59 = vmax.f32 %v1059_v55, 0.0 }
 0x30f   :  { %v988_v52 = vpop.f32.mrf.mxu2 }
 0x310   :  { %v992_v53 = vadd.f32 %v988_v52, %v958_v50  ;;  %v1022_v54 = vpop.f32.mrf.mxu3 }
 0x312   :  { %v1026_v56 = vadd.f32 %v1022_v54, %v992_v53  ;;  %v1056_v57 = vpop.f32.mrf.mxu1 }
 0x314   :  { %v1060_v58 = vadd.f32 %v1056_v57, %v1026_v56 }
 0x316   :  { %v1062_v60 = vmax.f32 %v1060_v58, 0.0 }
 0x318   :  { %v1063_v61 = vpack.c.bf16 %v1062_v60, %v1061_v59 }
 0x31a   :  { %1140 = vmatmul.bf16.vlgmr.msra.gmra.mxu2 %v1063_v61 }
 0x39d   :  { %v1141_v29 = vpop.f32.mrf.mxu2 }
 0x39e   :  { %v1142_v48 = vadd.f32 %v1674_v25, %v1141_v29 }
 0x3a0   :  { %1146 = vst [vmem:[%s1836_s4] sm:$0xff] %v1142_v48 }
 0x3a5   :  { %v1143_v62 = vpop.f32.mrf.mxu2 }
 0x3a6   :  { %v1144_v63 = vadd.f32 %v1674_v25, %v1143_v62 }
 0x3a8   :  { %1147 = vst [vmem:[%s1836_s4 + $0x8] sm:$0xff] %v1144_v63 }
 0x3a9   :  { %1152 = vsyncpa [#allocation3], 1 }

</bundles_post_ra>
